<compile_context>
chip_gen: v7x
topology: tpu7x:2x2x1
jax: 0.10.0
libtpu: 0.0.40
codegen_flags: <defaults>
</compile_context>

<pallas_src>
import functools

import jax
import jax.numpy as jnp
from jax.experimental import pallas as pl
from jax.experimental.pallas import tpu as pltpu


LANE = 128  # lane width: pad channel dims to this for lane-dense layout


# ------------------------------ kernel ------------------------------------- #

def _make_fused_mlp_kernel(num_hidden: int, eps: float):
    """Build a fused kernel for `num_hidden` (Linear->BN->ReLU) layers followed
    by one plain Linear.  Ref order:
        x, [w_i, gamma_i, beta_i] * num_hidden, w_last, b_last, out
    """

    def kernel(*refs):
        x_ref = refs[0]
        o_ref = refs[-1]
        idx = 1

        h = x_ref[...]
        for _ in range(num_hidden):
            w_ref, g_ref, beta_ref = refs[idx], refs[idx + 1], refs[idx + 2]
            idx += 3
            # Linear (bias omitted: it cancels exactly under training-mode BN).
            y = jnp.dot(h, w_ref[...], preferred_element_type=jnp.float32)
            # One-pass batch statistics (biased variance, as torch BN training).
            mean = jnp.mean(y, axis=0, keepdims=True)
            var = jnp.mean(y * y, axis=0, keepdims=True) - mean * mean
            # Fold gamma into the rsqrt scale -> epilogue is one FMA + ReLU.
            scale = g_ref[...] * jax.lax.rsqrt(var + eps)
            shift = beta_ref[...] - mean * scale
            h = jnp.maximum(y * scale + shift, 0.0)
            # dropout p=0.0 -> identity.

        # plain_last=True: final Linear with bias, no norm/activation.
        w_ref, b_ref = refs[idx], refs[idx + 1]
        o_ref[...] = (
            jnp.dot(h, w_ref[...], preferred_element_type=jnp.float32)
            + b_ref[...]
        )

    return kernel


# ------------------------------ wrappers ------------------------------------ #

def _round_up(n: int, m: int) -> int:
    return ((n + m - 1) // m) * m


def _pad2(a, rows: int, cols: int):
    r, c = a.shape
    return jnp.pad(a, ((0, rows - r), (0, cols - c)))  # zero padding


def pad_params_for_kernel(params, norms, lane: int = LANE):
    """Zero-pad all channel dims to a multiple of `lane` (done once)."""
    padded_params = []
    for i, lin in enumerate(params):
        cin, cout = lin["w"].shape
        cin_p, cout_p = _round_up(cin, lane), _round_up(cout, lane)
        entry = {"w": _pad2(lin["w"], cin_p, cout_p)}
        if i == len(params) - 1:            # only the last layer keeps its bias
            entry["b"] = _pad2(lin["b"], 1, cout_p)
        padded_params.append(entry)

    padded_norms = []
    for nrm in norms:
        cout = nrm["gamma"].shape[1]
        cout_p = _round_up(cout, lane)
        padded_norms.append({
            "gamma": _pad2(nrm["gamma"], 1, cout_p),  # pad with 0
            "beta": _pad2(nrm["beta"], 1, cout_p),    # pad with 0
        })
    return padded_params, padded_norms


@functools.partial(jax.jit, static_argnames=("out_channels", "eps"))
def mlp_forward(x, padded_params, padded_norms, out_channels: int,
                eps: float = 1e-5):
    """Fused MLP forward: one pallas_call for all layers."""
    N, K = x.shape
    K_p = padded_params[0]["w"].shape[0]
    M_p = padded_params[-1]["w"].shape[1]
    x_p = jnp.pad(x, ((0, 0), (0, K_p - K)))

    num_hidden = len(padded_params) - 1
    inputs = [x_p]
    for lin, nrm in zip(padded_params[:-1], padded_norms):
        inputs.extend([lin["w"], nrm["gamma"], nrm["beta"]])
    inputs.extend([padded_params[-1]["w"], padded_params[-1]["b"]])

    out = pl.pallas_call(
        _make_fused_mlp_kernel(num_hidden, eps),
        out_shape=jax.ShapeDtypeStruct((N, M_p), jnp.float32),
        in_specs=[pl.BlockSpec(memory_space=pltpu.MemorySpace.VMEM)] * len(inputs),
        out_specs=pl.BlockSpec(memory_space=pltpu.MemorySpace.VMEM),
    )(*inputs)

    return out[:, :out_channels]


# ------------------------------ params / reference -------------------------- #

def init_mlp_params(key, channel_list):
    """Deterministic init mimicking torch Linear/BatchNorm1d reset shapes."""
    params = []
    for cin, cout in zip(channel_list[:-1], channel_list[1:]):
        key, kw, kb = jax.random.split(key, 3)
        bound = 1.0 / jnp.sqrt(cin)
        w = jax.random.uniform(kw, (cin, cout), jnp.float32, -bound, bound)
        b = jax.random.uniform(kb, (1, cout), jnp.float32, -bound, bound)
        params.append({"w": w, "b": b})
    norms = []
    for cout in channel_list[1:-1]:  # plain_last=True -> no norm on last layer
        norms.append({
            "gamma": jnp.ones((1, cout), jnp.float32),   # BN reset: weight=1
            "beta": jnp.zeros((1, cout), jnp.float32),   # BN reset: bias=0
        })
    return params, norms


def mlp_reference(x, params, norms, eps=1e-5):
    """Pure-JAX reference matching the torch module exactly (bias kept)."""
    for lin, nrm in zip(params[:-1], norms):
        y = x @ lin["w"] + lin["b"]
        mean = jnp.mean(y, axis=0, keepdims=True)
        var = jnp.mean((y - mean) ** 2, axis=0, keepdims=True)
        y = (y - mean) / jnp.sqrt(var + eps)
        y = y * nrm["gamma"] + nrm["beta"]
        x = jnp.maximum(y, 0.0)
    return x @ params[-1]["w"] + params[-1]["b"]


# ------------------------------ main ---------------------------------------- #

if __name__ == "__main__":
    # MLP(in_channels=16, hidden_channels=32, out_channels=8, num_layers=3)
    # -> channel_list = [16, 32, 32, 8]
    channel_list = [16, 32, 32, 8]
    N = 32  # number of rows (nodes)

    key = jax.random.PRNGKey(0)
    key, kx = jax.random.split(key)
    x = jax.random.normal(kx, (N, channel_list[0]), jnp.float32)

    params, norms = init_mlp_params(key, channel_list)
    padded_params, padded_norms = pad_params_for_kernel(params, norms)

    out = mlp_forward(x, padded_params, padded_norms, channel_list[-1])
    out = jax.block_until_ready(out)

    ref = mlp_reference(x, params, norms)
    assert out.shape == (N, channel_list[-1])
    assert jnp.allclose(out, ref, atol=1e-4, rtol=1e-4), float(
        jnp.max(jnp.abs(out - ref)))

    print("KERNEL_OK")
</pallas_src>

<mosaic_0001>
module attributes {stable_mosaic.version = 11 : i64} {
  func.func @kernel(%arg0: memref<32x128xf32, #tpu.memory_space<vmem>>, %arg1: memref<128x128xf32, #tpu.memory_space<vmem>>, %arg2: memref<1x128xf32, #tpu.memory_space<vmem>>, %arg3: memref<1x128xf32, #tpu.memory_space<vmem>>, %arg4: memref<128x128xf32, #tpu.memory_space<vmem>>, %arg5: memref<1x128xf32, #tpu.memory_space<vmem>>, %arg6: memref<1x128xf32, #tpu.memory_space<vmem>>, %arg7: memref<128x128xf32, #tpu.memory_space<vmem>>, %arg8: memref<1x128xf32, #tpu.memory_space<vmem>>, %arg9: memref<32x128xf32, #tpu.memory_space<vmem>>) attributes {dimension_semantics = [], scalar_prefetch = 0 : i64, scratch_operands = 0 : i64, tpu.core_type = #tpu.core_type<tc>} {
    %c0 = arith.constant 0 : index
    %c0_0 = arith.constant 0 : index
    %0 = vector.load %arg0[%c0, %c0_0] : memref<32x128xf32, #tpu.memory_space<vmem>>, vector<32x128xf32>
    %c0_1 = arith.constant 0 : index
    %c0_2 = arith.constant 0 : index
    %1 = vector.load %arg1[%c0_1, %c0_2] : memref<128x128xf32, #tpu.memory_space<vmem>>, vector<128x128xf32>
    %cst = arith.constant dense<0.000000e+00> : vector<32x128xf32>
    %2 = tpu.matmul %0, %1, %cst {dimension_numbers = #tpu.dot_dimension_numbers<[1], [0], [0], [1], [0, 0, 1, 1], [], []>} : vector<32x128xf32>, vector<128x128xf32>, vector<32x128xf32> -> vector<32x128xf32>
    %cst_3 = arith.constant dense<0.000000e+00> : vector<128xf32>
    %3 = vector.multi_reduction <add>, %2, %cst_3 [0] : vector<32x128xf32> to vector<128xf32>
    %4 = vector.shape_cast %3 : vector<128xf32> to vector<1x128xf32>
    %cst_4 = arith.constant 3.200000e+01 : f32
    %5 = vector.broadcast %cst_4 : f32 to vector<1x128xf32>
    %6 = arith.divf %4, %5 : vector<1x128xf32>
    %7 = arith.mulf %2, %2 : vector<32x128xf32>
    %cst_5 = arith.constant dense<0.000000e+00> : vector<128xf32>
    %8 = vector.multi_reduction <add>, %7, %cst_5 [0] : vector<32x128xf32> to vector<128xf32>
    %9 = vector.shape_cast %8 : vector<128xf32> to vector<1x128xf32>
    %cst_6 = arith.constant 3.200000e+01 : f32
    %10 = vector.broadcast %cst_6 : f32 to vector<1x128xf32>
    %11 = arith.divf %9, %10 : vector<1x128xf32>
    %12 = arith.mulf %6, %6 : vector<1x128xf32>
    %13 = arith.subf %11, %12 : vector<1x128xf32>
    %c0_7 = arith.constant 0 : index
    %c0_8 = arith.constant 0 : index
    %14 = vector.load %arg2[%c0_7, %c0_8] : memref<1x128xf32, #tpu.memory_space<vmem>>, vector<1x128xf32>
    %cst_9 = arith.constant 9.99999974E-6 : f32
    %15 = vector.broadcast %cst_9 : f32 to vector<1x128xf32>
    %16 = arith.addf %13, %15 : vector<1x128xf32>
    %17 = math.rsqrt %16 : vector<1x128xf32>
    %18 = arith.mulf %14, %17 : vector<1x128xf32>
    %c0_10 = arith.constant 0 : index
    %c0_11 = arith.constant 0 : index
    %19 = vector.load %arg3[%c0_10, %c0_11] : memref<1x128xf32, #tpu.memory_space<vmem>>, vector<1x128xf32>
    %20 = arith.mulf %6, %18 : vector<1x128xf32>
    %21 = arith.subf %19, %20 : vector<1x128xf32>
    %22 = vector.broadcast %18 : vector<1x128xf32> to vector<32x128xf32>
    %23 = arith.mulf %2, %22 : vector<32x128xf32>
    %24 = vector.broadcast %21 : vector<1x128xf32> to vector<32x128xf32>
    %25 = arith.addf %23, %24 : vector<32x128xf32>
    %cst_12 = arith.constant 0.000000e+00 : f32
    %26 = vector.broadcast %cst_12 : f32 to vector<32x128xf32>
    %27 = arith.maximumf %25, %26 : vector<32x128xf32>
    %c0_13 = arith.constant 0 : index
    %c0_14 = arith.constant 0 : index
    %28 = vector.load %arg4[%c0_13, %c0_14] : memref<128x128xf32, #tpu.memory_space<vmem>>, vector<128x128xf32>
    %cst_15 = arith.constant dense<0.000000e+00> : vector<32x128xf32>
    %29 = tpu.matmul %27, %28, %cst_15 {dimension_numbers = #tpu.dot_dimension_numbers<[1], [0], [0], [1], [0, 0, 1, 1], [], []>} : vector<32x128xf32>, vector<128x128xf32>, vector<32x128xf32> -> vector<32x128xf32>
    %cst_16 = arith.constant dense<0.000000e+00> : vector<128xf32>
    %30 = vector.multi_reduction <add>, %29, %cst_16 [0] : vector<32x128xf32> to vector<128xf32>
    %31 = vector.shape_cast %30 : vector<128xf32> to vector<1x128xf32>
    %cst_17 = arith.constant 3.200000e+01 : f32
    %32 = vector.broadcast %cst_17 : f32 to vector<1x128xf32>
    %33 = arith.divf %31, %32 : vector<1x128xf32>
    %34 = arith.mulf %29, %29 : vector<32x128xf32>
    %cst_18 = arith.constant dense<0.000000e+00> : vector<128xf32>
    %35 = vector.multi_reduction <add>, %34, %cst_18 [0] : vector<32x128xf32> to vector<128xf32>
    %36 = vector.shape_cast %35 : vector<128xf32> to vector<1x128xf32>
    %cst_19 = arith.constant 3.200000e+01 : f32
    %37 = vector.broadcast %cst_19 : f32 to vector<1x128xf32>
    %38 = arith.divf %36, %37 : vector<1x128xf32>
    %39 = arith.mulf %33, %33 : vector<1x128xf32>
    %40 = arith.subf %38, %39 : vector<1x128xf32>
    %c0_20 = arith.constant 0 : index
    %c0_21 = arith.constant 0 : index
    %41 = vector.load %arg5[%c0_20, %c0_21] : memref<1x128xf32, #tpu.memory_space<vmem>>, vector<1x128xf32>
    %cst_22 = arith.constant 9.99999974E-6 : f32
    %42 = vector.broadcast %cst_22 : f32 to vector<1x128xf32>
    %43 = arith.addf %40, %42 : vector<1x128xf32>
    %44 = math.rsqrt %43 : vector<1x128xf32>
    %45 = arith.mulf %41, %44 : vector<1x128xf32>
    %c0_23 = arith.constant 0 : index
    %c0_24 = arith.constant 0 : index
    %46 = vector.load %arg6[%c0_23, %c0_24] : memref<1x128xf32, #tpu.memory_space<vmem>>, vector<1x128xf32>
    %47 = arith.mulf %33, %45 : vector<1x128xf32>
    %48 = arith.subf %46, %47 : vector<1x128xf32>
    %49 = vector.broadcast %45 : vector<1x128xf32> to vector<32x128xf32>
    %50 = arith.mulf %29, %49 : vector<32x128xf32>
    %51 = vector.broadcast %48 : vector<1x128xf32> to vector<32x128xf32>
    %52 = arith.addf %50, %51 : vector<32x128xf32>
    %cst_25 = arith.constant 0.000000e+00 : f32
    %53 = vector.broadcast %cst_25 : f32 to vector<32x128xf32>
    %54 = arith.maximumf %52, %53 : vector<32x128xf32>
    %c0_26 = arith.constant 0 : index
    %c0_27 = arith.constant 0 : index
    %55 = vector.load %arg7[%c0_26, %c0_27] : memref<128x128xf32, #tpu.memory_space<vmem>>, vector<128x128xf32>
    %cst_28 = arith.constant dense<0.000000e+00> : vector<32x128xf32>
    %56 = tpu.matmul %54, %55, %cst_28 {dimension_numbers = #tpu.dot_dimension_numbers<[1], [0], [0], [1], [0, 0, 1, 1], [], []>} : vector<32x128xf32>, vector<128x128xf32>, vector<32x128xf32> -> vector<32x128xf32>
    %c0_29 = arith.constant 0 : index
    %c0_30 = arith.constant 0 : index
    %57 = vector.load %arg8[%c0_29, %c0_30] : memref<1x128xf32, #tpu.memory_space<vmem>>, vector<1x128xf32>
    %58 = vector.broadcast %57 : vector<1x128xf32> to vector<32x128xf32>
    %59 = arith.addf %56, %58 : vector<32x128xf32>
    %c0_31 = arith.constant 0 : index
    %c0_32 = arith.constant 0 : index
    %60 = vector.load %arg9[%c0_31, %c0_32] : memref<32x128xf32, #tpu.memory_space<vmem>>, vector<32x128xf32>
    tpu.vector_store %arg9[%c0_31, %c0_32], %59 {strides = array<i32>} : memref<32x128xf32, #tpu.memory_space<vmem>>, vector<32x128xf32>,
    return
  }
}

</mosaic_0001>

<bundles_post_ra>
// kernel: mlp_forward.1
= control target key start
LH: loop header
LB: loop body
LE: loop exit
PB: predicated region body
PF: predicated region fallthrough
CT: control target
= control target key end

     0   :  { %14 = vsyncpa [#allocation3], 0  ;;  %s1064_s0 = inlined_call_operand.vmem [shape: f32[32,128], index: 0, kind: input, shape index: {}]   ;;  %s1065_s1 = inlined_call_operand.hbm [shape: f32[128,128], index: 1, kind: input, shape index: {}]   ;;  %s1066_s2 = inlined_call_operand.vmem [shape: f32[1,128], index: 2, kind: input, shape index: {}]   ;;  %s1067_s3 = inlined_call_operand.vmem [shape: f32[1,128], index: 3, kind: input, shape index: {}]   ;;  %s1068_s4 = inlined_call_operand.hbm [shape: f32[128,128], index: 4, kind: input, shape index: {}]   ;;  %s1069_s5 = inlined_call_operand.vmem [shape: f32[1,128], index: 5, kind: input, shape index: {}]   ;;  %s1070_s6 = inlined_call_operand.vmem [shape: f32[1,128], index: 6, kind: input, shape index: {}]   ;;  %s1071_s7 = inlined_call_operand.vmem [shape: f32[128,128], index: 7, kind: input, shape index: {}]   ;;  %s1072_s8 = inlined_call_operand.hbm [shape: f32[1,128], index: 8, kind: input, shape index: {}]   ;;  %s1073_s9 = inlined_call_operand.vmem [shape: f32[32,128], index: 9, kind: output, shape index: {}]  }
   0x1   :  { %15 = vsyncpa [#allocation5], 0  ;;  %s876_s30 = smov [#allocation4]   ;;  %s877_s11 = smov [#allocation2]  }
   0x2   :  { %s39_s10 = sshll.u32 %s876_s30, 4  ;;  %s23_s12 = sshll.u32 %s877_s11, 4  ;;  %s40_s10 = int_to_ptr.vmem [resolvable:$true] %s39_s10  ;;  %s931_s12 = int_to_ptr.vmem [resolvable:$true] %s23_s12 }
   0x3   :  { %s806_s15 = scalar_lea.hbm %s1068_s4, 2048 }
   0x4   :  { %p807_p0 = scmp.ne.s32.totalorder %s1068_s4, %s806_s15  ;;  %p810_p1 = scmp.lt.u32.totalorder %s806_s15, %s1068_s4 }
   0x6   :  { %p812_p2 = pnand %p810_p1, %p807_p0 }
   0x8   :  { %815 = shalt.err (!%p812_p2)
}
   0x9   :  { %s816_s20 = scalar_lea.vmem %s40_s10, 2048  ;;  %p821_p4 = scmp.lt.s32.totalorder %s40_s10, %s40_s10 }
   0xa   :  { %p817_p3 = scmp.ne.s32.totalorder %s40_s10, %s816_s20  ;;  %p822_p5 = scmp.lt.s32.totalorder %s816_s20, %s816_s20 }
   0xc   :  { %p823_p6 = por %p822_p5, %p821_p4 }
   0xe   :  { %p824_p7 = pnand %p823_p6, %p817_p3 }
  0x10   :  { %827 = shalt.err (!%p824_p7)
}
  0x11   :  { %s878_s21 = smov 128   ;;  %s879_s22 = smov 8  }
  0x12   :  { %45 = dma.hbm_to_vmem [thread:$0]  %s1068_s4, 2048, %s40_s10, [#allocation5], %s878_s21, %s878_s21, %s879_s22  }
  0x13   :  { %s828_s27 = scalar_lea.hbm %s1065_s1, 2048 }
  0x14   :  { %p829_p8 = scmp.ne.s32.totalorder %s1065_s1, %s828_s27  ;;  %p832_p9 = scmp.lt.u32.totalorder %s828_s27, %s1065_s1 }
  0x16   :  { %p834_p10 = pnand %p832_p9, %p829_p8 }
  0x18   :  { %837 = shalt.err (!%p834_p10)
}
  0x19   :  { %s838_s13 = scalar_lea.vmem %s931_s12, 2048  ;;  %p843_p12 = scmp.lt.s32.totalorder %s931_s12, %s931_s12 }
  0x1a   :  { %p839_p11 = scmp.ne.s32.totalorder %s931_s12, %s838_s13  ;;  %p844_p13 = scmp.lt.s32.totalorder %s838_s13, %s838_s13 }
  0x1c   :  { %p845_p0 = por %p844_p13, %p843_p12 }
  0x1e   :  { %p846_p1 = pnand %p845_p0, %p839_p11 }
  0x20   :  { %849 = shalt.err (!%p846_p1)
}
  0x21   :  { %29 = dma.hbm_to_vmem [thread:$0]  %s1065_s1, 2048, %s931_s12, [#allocation3], %s878_s21, %s878_s21, %s879_s22  }
  0x22   :  { %s880_s14 = smov [#allocation6]   ;;  %s850_s18 = scalar_lea.hbm %s1072_s8, 16 }
  0x23   :  { %s58_s15 = sshll.u32 %s880_s14, 4  ;;  %p851_p2 = scmp.ne.s32.totalorder %s1072_s8, %s850_s18  ;;  %s59_s15 = int_to_ptr.vmem [resolvable:$true] %s58_s15 }
  0x24   :  { %p854_p3 = scmp.lt.u32.totalorder %s850_s18, %s1072_s8 }
  0x26   :  { %p856_p4 = pnand %p854_p3, %p851_p2 }
  0x28   :  { %859 = shalt.err (!%p856_p4)
}
  0x29   :  { %s860_s25 = scalar_lea.vmem %s59_s15, 16  ;;  %s864_s1 = scalar_lea.vmem %s59_s15, 32 }
  0x2a   :  { %p861_p5 = scmp.ne.s32.totalorder %s59_s15, %s860_s25  ;;  %p865_p6 = scmp.lt.s32.totalorder %s59_s15, %s59_s15 }
  0x2b   :  { %p866_p7 = scmp.lt.s32.totalorder %s864_s1, %s860_s25 }
  0x2d   :  { %p867_p8 = por %p866_p7, %p865_p6 }
  0x2f   :  { %p868_p9 = pnand %p867_p8, %p861_p5 }
  0x31   :  { %871 = shalt.err (!%p868_p9)
}
  0x32   :  { %61 = dma.hbm_to_vmem [thread:$0]  %s1072_s8, 16, %s59_s15, [#allocation5]  }
  0x33   :  { %872 = dma.done.wait [#allocation3], 2048  }
  0x34   :  { %873 = vsyncadd [#allocation3], 4294965248 }
  0x35   :  { %874 = dma.done.wait [#allocation5], 2064  }
  0x36   :  { %875 = vsyncadd [#allocation5], 4294965232  ;;  %v75_v0 = vld [vmem:[#allocation2] sm:$0xff]  ;;  %v76_v1 = vld [vmem:[#allocation2 + $0x8] sm:$0xff] }
  0x37   :  { %v77_v2 = vld [vmem:[#allocation2 + $0x10] sm:$0xff]  ;;  %v685_v3 = vpack.c.bf16 %v76_v1, %v75_v0  ;;  %v78_v4 = vld [vmem:[#allocation2 + $0x18] sm:$0xff]  ;;  %v79_v6 = vld [vmem:[#allocation2 + $0x20] sm:$0xff] }
  0x38   :  { %v689_v5 = vpack.c.bf16 %v78_v4, %v77_v2  ;;  %v80_v7 = vld [vmem:[#allocation2 + $0x28] sm:$0xff]  ;;  %v71_v9 = vld [vmem:[%s1064_s0] sm:$0xff]  ;;  %v81_v10 = vld [vmem:[#allocation2 + $0x30] sm:$0xff] }
  0x39   :  { %686 = vmatprep.subr.bf16.mxu0 %v685_v3  ;;  %v693_v8 = vpack.c.bf16 %v80_v7, %v79_v6  ;;  %v82_v11 = vld [vmem:[#allocation2 + $0x38] sm:$0xff]  ;;  %603 = vmatprep.mubr.f32.mxu0 %v71_v9  ;;  %v83_v13 = vld [vmem:[#allocation2 + $0x40] sm:$0xff]  ;;  %v84_v14 = vld [vmem:[#allocation2 + $0x48] sm:$0xff] }
  0x3a   :  { %688 = vmatpush3.bf16.msra.mxu0 %v685_v3  ;;  %v697_v12 = vpack.c.bf16 %v82_v11, %v81_v10  ;;  %v701_v15 = vpack.c.bf16 %v84_v14, %v83_v13  ;;  %v85_v16 = vld [vmem:[#allocation2 + $0x50] sm:$0xff]  ;;  %v86_v17 = vld [vmem:[#allocation2 + $0x58] sm:$0xff]  ;;  %v87_v19 = vld [vmem:[#allocation2 + $0x60] sm:$0xff] }
  0x3b   :  { %690 = vmatprep.subr.bf16.mxu0 %v689_v5  ;;  %v705_v18 = vpack.c.bf16 %v86_v17, %v85_v16  ;;  %v88_v20 = vld [vmem:[#allocation2 + $0x68] sm:$0xff]  ;;  %v89_v22 = vld [vmem:[#allocation2 + $0x70] sm:$0xff]  ;;  %v90_v23 = vld [vmem:[#allocation2 + $0x78] sm:$0xff] }
  0x3c   :  { %v709_v21 = vpack.c.bf16 %v88_v20, %v87_v19  ;;  %v713_v24 = vpack.c.bf16 %v90_v23, %v89_v22  ;;  %v72_v25 = vld [vmem:[%s1064_s0 + $0x8] sm:$0xff]  ;;  %v73_v26 = vld [vmem:[%s1064_s0 + $0x10] sm:$0xff]  ;;  %v74_v27 = vld [vmem:[%s1064_s0 + $0x18] sm:$0xff]  ;;  %v211_v19 = vlaneseq }
  0x3d   :  { %v234_v28 = vld [vmem:[#allocation4] sm:$0xff]  ;;  %v235_v29 = vld [vmem:[#allocation4 + $0x8] sm:$0xff]  ;;  %v236_v31 = vld [vmem:[#allocation4 + $0x10] sm:$0xff] }
  0x3e   :  { %692 = vmatpush3.bf16.msra.mxu0 %v689_v5  ;;  %v717_v30 = vpack.c.bf16 %v235_v29, %v234_v28  ;;  %v237_v32 = vld [vmem:[#allocation4 + $0x18] sm:$0xff]  ;;  %v238_v34 = vld [vmem:[#allocation4 + $0x20] sm:$0xff]  ;;  %v239_v35 = vld [vmem:[#allocation4 + $0x28] sm:$0xff]  ;;  %v212_v20 = vshrl.u32 %v211_v19, 7 }
  0x3f   :  { %694 = vmatprep.subr.bf16.mxu0 %v693_v8  ;;  %v721_v33 = vpack.c.bf16 %v237_v32, %v236_v31  ;;  %v725_v36 = vpack.c.bf16 %v239_v35, %v238_v34  ;;  %v240_v37 = vld [vmem:[#allocation4 + $0x30] sm:$0xff]  ;;  %v241_v38 = vld [vmem:[#allocation4 + $0x38] sm:$0xff]  ;;  %v242_v40 = vld [vmem:[#allocation4 + $0x40] sm:$0xff] }
  0x40   :  { %718 = vmatprep.subr.bf16.mxu1 %v717_v30  ;;  %v729_v39 = vpack.c.bf16 %v241_v38, %v240_v37  ;;  %v243_v41 = vld [vmem:[#allocation4 + $0x48] sm:$0xff]  ;;  %v244_v43 = vld [vmem:[#allocation4 + $0x50] sm:$0xff]  ;;  %v245_v44 = vld [vmem:[#allocation4 + $0x58] sm:$0xff]  ;;  %v989_v22 = vsub.s32 0, %v212_v20 }
  0x41   :  { %720 = vmatpush3.bf16.msra.mxu1 %v717_v30  ;;  %v733_v42 = vpack.c.bf16 %v243_v41, %v242_v40  ;;  %v737_v45 = vpack.c.bf16 %v245_v44, %v244_v43  ;;  %v246_v46 = vld [vmem:[#allocation4 + $0x60] sm:$0xff]  ;;  %v247_v47 = vld [vmem:[#allocation4 + $0x68] sm:$0xff]  ;;  %v248_v49 = vld [vmem:[#allocation4 + $0x70] sm:$0xff] }
  0x42   :  { %696 = vmatpush3.bf16.msra.mxu0 %v693_v8  ;;  %722 = vmatprep.subr.bf16.mxu1 %v721_v33  ;;  %v741_v48 = vpack.c.bf16 %v247_v47, %v246_v46  ;;  %v249_v50 = vld [vmem:[#allocation4 + $0x78] sm:$0xff]  ;;  %v393_v43 = vld [vmem:[%s1071_s7 + $0x8] sm:$0xff] }
  0x43   :  { %698 = vmatprep.subr.bf16.mxu0 %v697_v12  ;;  %v745_v51 = vpack.c.bf16 %v249_v50, %v248_v49  ;;  %v395_v46 = vld [vmem:[%s1071_s7 + $0x18] sm:$0xff]  ;;  %v397_v49 = vld [vmem:[%s1071_s7 + $0x28] sm:$0xff] }
  0x45   :  { %724 = vmatpush3.bf16.msra.mxu1 %v721_v33 }
  0x46   :  { %700 = vmatpush3.bf16.msra.mxu0 %v697_v12  ;;  %726 = vmatprep.subr.bf16.mxu1 %v725_v36 }
  0x47   :  { %702 = vmatprep.subr.bf16.mxu0 %v701_v15 }
  0x49   :  { %728 = vmatpush3.bf16.msra.mxu1 %v725_v36 }
  0x4a   :  { %704 = vmatpush3.bf16.msra.mxu0 %v701_v15  ;;  %730 = vmatprep.subr.bf16.mxu1 %v729_v39 }
  0x4b   :  { %706 = vmatprep.subr.bf16.mxu0 %v705_v18 }
  0x4d   :  { %732 = vmatpush3.bf16.msra.mxu1 %v729_v39 }
  0x4e   :  { %708 = vmatpush3.bf16.msra.mxu0 %v705_v18  ;;  %734 = vmatprep.subr.bf16.mxu1 %v733_v42 }
  0x4f   :  { %710 = vmatprep.subr.bf16.mxu0 %v709_v21 }
  0x51   :  { %736 = vmatpush3.bf16.msra.mxu1 %v733_v42  ;;  %v392_v42 = vld [vmem:[%s1071_s7] sm:$0xff] }
  0x52   :  { %712 = vmatpush3.bf16.msra.mxu0 %v709_v21  ;;  %738 = vmatprep.subr.bf16.mxu1 %v737_v45  ;;  %v203_v21 = vld [vmem:[%s1066_s2] sm:$0x1]  ;;  %v749_v44 = vpack.c.bf16 %v393_v43, %v392_v42 }
  0x53   :  { %714 = vmatprep.subr.bf16.mxu0 %v713_v24 }
  0x55   :  { %740 = vmatpush3.bf16.msra.mxu1 %v737_v45  ;;  %v394_v45 = vld [vmem:[%s1071_s7 + $0x10] sm:$0xff] }
  0x56   :  { %716 = vmatpush3.bf16.msra.mxu0 %v713_v24  ;;  %742 = vmatprep.subr.bf16.mxu1 %v741_v48  ;;  %v753_v47 = vpack.c.bf16 %v395_v46, %v394_v45 }
  0x57   :  { %750 = vmatprep.subr.bf16.mxu0 %v749_v44 }
  0x59   :  { %604 = vmatmul.mubr.f32.vlgmr.msra.gmra.mrb[0].mxu0 %v72_v25  ;;  %744 = vmatpush3.bf16.msra.mxu1 %v741_v48  ;;  %v207_v25 = vld [vmem:[%s1067_s3] sm:$0x1] }
  0x5a   :  { %606 = vmatprep.mubr.f32.mxu0 %v73_v26  ;;  %746 = vmatprep.subr.bf16.mxu1 %v745_v51  ;;  %v396_v48 = vld [vmem:[%s1071_s7 + $0x20] sm:$0xff] }
  0x5b   :  { %752 = vmatpush3.bf16.msra.mxu0 %v749_v44  ;;  %v757_v50 = vpack.c.bf16 %v397_v49, %v396_v48 }
  0x5c   :  { %754 = vmatprep.subr.bf16.mxu0 %v753_v47 }
  0x5d   :  { %607 = vmatmul.mubr.f32.gmra.mrb[2].mxu0 %v74_v27  ;;  %748 = vmatpush3.bf16.msra.mxu1 %v745_v51  ;;  %v398_v51 = vld [vmem:[%s1071_s7 + $0x30] sm:$0xff] }
  0x5e   :  { %781 = vmatprep.subr.bf16.mxu1 %v749_v44 }
  0x5f   :  { %756 = vmatpush3.bf16.msra.mxu0 %v753_v47 }
  0x60   :  { %758 = vmatprep.subr.bf16.mxu0 %v757_v50 }
  0x63   :  { %760 = vmatpush3.bf16.msra.mxu0 %v757_v50 }
 0x12c   :  { %v605_v52 = vpop.f32.mrb[0].mxu0 }
 0x12d   :  { %v188_v53 = vmul.f32 %v605_v52, %v605_v52  ;;  %v157_v54 = vpop.f32.mrb[1].mxu0 }
 0x12e   :  { %v176_v55 = vadd.f32 %v605_v52, %v157_v54  ;;  %v187_v56 = vmul.f32 %v157_v54, %v157_v54 }
 0x130   :  { %v191_v57 = vadd.f32 %v188_v53, %v187_v56  ;;  %v608_v58 = vpop.f32.mrb[2].mxu0 }
 0x131   :  { %v167_v59 = vpop.f32.mrb[3].mxu0  ;;  %v190_v62 = vmul.f32 %v608_v58, %v608_v58 }
 0x132   :  { %v177_v60 = vadd.f32 %v176_v55, %v167_v59  ;;  %v189_v61 = vmul.f32 %v167_v59, %v167_v59  ;;  %v401_v55 = vld [vmem:[%s1071_s7 + $0x48] sm:$0xff] }
 0x134   :  { %v178_v63 = vadd.f32 %v608_v58, %v177_v60  ;;  %v192_v0 = vadd.f32 %v191_v57, %v189_v61  ;;  %v402_v57 = vld [vmem:[%s1071_s7 + $0x50] sm:$0xff]  ;;  %v404_v60 = vld [vmem:[%s1071_s7 + $0x60] sm:$0xff]  ;;  %v405_v61 = vld [vmem:[%s1071_s7 + $0x68] sm:$0xff] }
 0x136   :  { %v179_v1 = vrot.slane %v178_v63, 4  ;;  %v193_v2 = vadd.f32 %v192_v0, %v190_v62  ;;  %v773_v62 = vpack.c.bf16 %v405_v61, %v404_v60  ;;  %v407_v0 = vld [vmem:[%s1071_s7 + $0x78] sm:$0xff] }
 0x138   :  { %v180_v3 = vadd.f32 %v179_v1, %v178_v63  ;;  %v194_v4 = vrot.slane %v193_v2, 4  ;;  %v406_v63 = vld [vmem:[%s1071_s7 + $0x70] sm:$0xff] }
 0x139   :  { %v777_v1 = vpack.c.bf16 %v407_v0, %v406_v63 }
 0x13a   :  { %v181_v5 = vrot.slane %v180_v3, 2  ;;  %v195_v6 = vadd.f32 %v194_v4, %v193_v2 }
 0x13c   :  { %v182_v7 = vadd.f32 %v181_v5, %v180_v3  ;;  %v196_v8 = vrot.slane %v195_v6, 2 }
 0x13e   :  { %v183_v9 = vrot.slane %v182_v7, 1  ;;  %v197_v10 = vadd.f32 %v196_v8, %v195_v6 }
 0x140   :  { %v184_v11 = vadd.f32 %v183_v9, %v182_v7  ;;  %v198_v12 = vrot.slane %v197_v10, 1 }
 0x142   :  { %v186_v13 = vmul.f32 0.03125, %v184_v11  ;;  %v199_v14 = vadd.f32 %v198_v12, %v197_v10 }
 0x144   :  { %v200_v15 = vmul.f32 0.03125, %v199_v14  ;;  %v201_v16 = vmul.f32 %v186_v13, %v186_v13 }
 0x146   :  { %v202_v17 = vsub.f32 %v200_v15, %v201_v16 }
 0x148   :  { %v204_v18 = vadd.f32 1e-05, %v202_v17 }
 0x14a   :  { %802 = vrsqrt.f32 %v204_v18 }
 0x154   :  { %v803_v23 = vpop.eup %802 }
 0x155   :  { %v206_v24 = vmul.f32 %v803_v23, %v203_v21 }
 0x157   :  { %v214_v26 = vrot.slane %v206_v24, %v989_v22  ;;  %v208_v27 = vmul.f32 %v206_v24, %v186_v13 }
 0x159   :  { %v218_v28 = vmul.f32 %v214_v26, %v167_v59  ;;  %v209_v29 = vsub.f32 %v207_v25, %v208_v27  ;;  %v216_v30 = vmul.f32 %v214_v26, %v157_v54  ;;  %v217_v31 = vmul.f32 %v605_v52, %v214_v26  ;;  %v399_v52 = vld [vmem:[%s1071_s7 + $0x38] sm:$0xff]  ;;  %v400_v54 = vld [vmem:[%s1071_s7 + $0x40] sm:$0xff] }
 0x15a   :  { %v219_v32 = vmul.f32 %v608_v58, %v214_v26  ;;  %v761_v53 = vpack.c.bf16 %v399_v52, %v398_v51  ;;  %v765_v56 = vpack.c.bf16 %v401_v55, %v400_v54  ;;  %v403_v58 = vld [vmem:[%s1071_s7 + $0x58] sm:$0xff]  ;;  %v510_v54 = vld [vmem:[#allocation6] ss:$0 sm:$0xff] }
 0x15b   :  { %v224_v33 = vrot.slane %v209_v29, %v989_v22  ;;  %v769_v59 = vpack.c.bf16 %v403_v58, %v402_v57 }
 0x15c   :  { %762 = vmatprep.subr.bf16.mxu0 %v761_v53 }
 0x15d   :  { %v226_v34 = vadd.f32 %v224_v33, %v216_v30  ;;  %v227_v35 = vadd.f32 %v224_v33, %v217_v31  ;;  %v228_v36 = vadd.f32 %v224_v33, %v218_v28  ;;  %v229_v37 = vadd.f32 %v224_v33, %v219_v32  ;;  %764 = vmatpush3.bf16.msra.mxu0 %v761_v53 }
 0x15e   :  { %766 = vmatprep.subr.bf16.mxu0 %v765_v56 }
 0x15f   :  { %v230_v38 = vmax.f32 %v226_v34, 0.0  ;;  %v231_v39 = vmax.f32 %v227_v35, 0.0  ;;  %v232_v40 = vmax.f32 %v228_v36, 0.0  ;;  %v233_v41 = vmax.f32 %v229_v37, 0.0  ;;  %v361_v34 = vld [vmem:[%s1069_s5] sm:$0x1] }
 0x160   :  { %v365_v37 = vld [vmem:[%s1070_s6] sm:$0x1] }
 0x161   :  { %641 = vmatprep.mubr.f32.mxu1 %v230_v38  ;;  %768 = vmatpush3.bf16.msra.mxu0 %v765_v56 }
 0x162   :  { %642 = vmatmul.mubr.f32.vlgmr.msra.gmra.mrb[0].mxu1 %v231_v39  ;;  %770 = vmatprep.subr.bf16.mxu0 %v769_v59 }
 0x163   :  { %644 = vmatprep.mubr.f32.mxu1 %v232_v40  ;;  %789 = vmatpush3.bf16.msra.mxu1 %v749_v44 }
 0x164   :  { %782 = vmatprep.subr.bf16.mxu1 %v753_v47 }
 0x165   :  { %772 = vmatpush3.bf16.msra.mxu0 %v769_v59 }
 0x166   :  { %645 = vmatmul.mubr.f32.gmra.mrb[2].mxu1 %v233_v41  ;;  %774 = vmatprep.subr.bf16.mxu0 %v773_v62 }
 0x167   :  { %790 = vmatpush3.bf16.msra.mxu1 %v753_v47 }
 0x168   :  { %783 = vmatprep.subr.bf16.mxu1 %v757_v50 }
 0x169   :  { %776 = vmatpush3.bf16.msra.mxu0 %v773_v62 }
 0x16a   :  { %778 = vmatprep.subr.bf16.mxu0 %v777_v1 }
 0x16b   :  { %791 = vmatpush3.bf16.msra.mxu1 %v757_v50 }
 0x16c   :  { %784 = vmatprep.subr.bf16.mxu1 %v761_v53 }
 0x16d   :  { %780 = vmatpush3.bf16.msra.mxu0 %v777_v1 }
 0x16f   :  { %792 = vmatpush3.bf16.msra.mxu1 %v761_v53 }
 0x170   :  { %785 = vmatprep.subr.bf16.mxu1 %v765_v56 }
 0x173   :  { %793 = vmatpush3.bf16.msra.mxu1 %v765_v56 }
 0x174   :  { %786 = vmatprep.subr.bf16.mxu1 %v769_v59 }
 0x177   :  { %794 = vmatpush3.bf16.msra.mxu1 %v769_v59 }
 0x178   :  { %787 = vmatprep.subr.bf16.mxu1 %v773_v62 }
 0x17b   :  { %795 = vmatpush3.bf16.msra.mxu1 %v773_v62 }
 0x17c   :  { %788 = vmatprep.subr.bf16.mxu1 %v777_v1 }
 0x17f   :  { %796 = vmatpush3.bf16.msra.mxu1 %v777_v1 }
 0x235   :  { %v643_v2 = vpop.f32.mrb[0].mxu1 }
 0x236   :  { %v346_v3 = vmul.f32 %v643_v2, %v643_v2  ;;  %v316_v4 = vpop.f32.mrb[1].mxu1 }
 0x237   :  { %v335_v5 = vadd.f32 %v643_v2, %v316_v4  ;;  %v345_v6 = vmul.f32 %v316_v4, %v316_v4 }
 0x239   :  { %v349_v7 = vadd.f32 %v346_v3, %v345_v6  ;;  %v646_v8 = vpop.f32.mrb[2].mxu1 }
 0x23a   :  { %v326_v9 = vpop.f32.mrb[3].mxu1  ;;  %v348_v12 = vmul.f32 %v646_v8, %v646_v8 }
 0x23b   :  { %v336_v10 = vadd.f32 %v335_v5, %v326_v9  ;;  %v347_v11 = vmul.f32 %v326_v9, %v326_v9 }
 0x23d   :  { %v337_v13 = vadd.f32 %v646_v8, %v336_v10  ;;  %v350_v14 = vadd.f32 %v349_v7, %v347_v11 }
 0x23f   :  { %v338_v15 = vrot.slane %v337_v13, 4  ;;  %v351_v16 = vadd.f32 %v350_v14, %v348_v12 }
 0x241   :  { %v339_v17 = vadd.f32 %v338_v15, %v337_v13  ;;  %v352_v18 = vrot.slane %v351_v16, 4 }
 0x243   :  { %v340_v19 = vrot.slane %v339_v17, 2  ;;  %v353_v20 = vadd.f32 %v352_v18, %v351_v16 }
 0x245   :  { %v341_v21 = vadd.f32 %v340_v19, %v339_v17  ;;  %v354_v23 = vrot.slane %v353_v20, 2 }
 0x247   :  { %v342_v24 = vrot.slane %v341_v21, 1  ;;  %v355_v25 = vadd.f32 %v354_v23, %v353_v20 }
 0x249   :  { %v343_v26 = vadd.f32 %v342_v24, %v341_v21  ;;  %v356_v27 = vrot.slane %v355_v25, 1 }
 0x24b   :  { %v344_v28 = vmul.f32 0.03125, %v343_v26  ;;  %v357_v29 = vadd.f32 %v356_v27, %v355_v25 }
 0x24d   :  { %v358_v30 = vmul.f32 0.03125, %v357_v29  ;;  %v359_v31 = vmul.f32 %v344_v28, %v344_v28 }
 0x24f   :  { %v360_v32 = vsub.f32 %v358_v30, %v359_v31 }
 0x251   :  { %v362_v33 = vadd.f32 1e-05, %v360_v32 }
 0x253   :  { %804 = vrsqrt.f32 %v362_v33 }
 0x25d   :  { %v805_v35 = vpop.eup %804 }
 0x25e   :  { %v364_v36 = vmul.f32 %v805_v35, %v361_v34 }
 0x260   :  { %v366_v38 = vmul.f32 %v364_v36, %v344_v28  ;;  %v372_v39 = vrot.slane %v364_v36, %v989_v22 }
 0x262   :  { %v376_v40 = vmul.f32 %v372_v39, %v326_v9  ;;  %v367_v41 = vsub.f32 %v365_v37, %v366_v38  ;;  %v374_v42 = vmul.f32 %v372_v39, %v316_v4  ;;  %v375_v43 = vmul.f32 %v643_v2, %v372_v39 }
 0x263   :  { %v377_v44 = vmul.f32 %v646_v8, %v372_v39 }
 0x264   :  { %v382_v45 = vrot.slane %v367_v41, %v989_v22 }
 0x266   :  { %v384_v46 = vadd.f32 %v382_v45, %v374_v42  ;;  %v386_v47 = vadd.f32 %v382_v45, %v376_v40  ;;  %v385_v48 = vadd.f32 %v382_v45, %v375_v43  ;;  %v387_v49 = vadd.f32 %v382_v45, %v377_v44 }
 0x268   :  { %v388_v50 = vmax.f32 %v384_v46, 0.0  ;;  %v390_v51 = vmax.f32 %v386_v47, 0.0  ;;  %v389_v52 = vmax.f32 %v385_v48, 0.0  ;;  %v391_v53 = vmax.f32 %v387_v49, 0.0 }
 0x26a   :  { %679 = vmatprep.mubr.f32.mxu0 %v388_v50  ;;  %682 = vmatprep.mubr.f32.mxu1 %v390_v51 }
 0x26b   :  { %680 = vmatmul.mubr.f32.vlgmr.msra.gmra.mrb[4].mxu0 %v389_v52  ;;  %683 = vmatmul.mubr.f32.vlgmr.msra.gmra.mrb[4].mxu1 %v391_v53 }
 0x33e   :  { %v681_v55 = vpop.f32.mrb[4].mxu0  ;;  %v684_v56 = vpop.f32.mrb[4].mxu1 }
 0x33f   :  { %v487_v57 = vadd.f32 %v681_v55, %v510_v54  ;;  %v497_v58 = vadd.f32 %v684_v56, %v510_v54  ;;  %v481_v59 = vpop.f32.mrb[5].mxu0  ;;  %v491_v60 = vpop.f32.mrb[5].mxu1 }
 0x340   :  { %v482_v22 = vadd.f32 %v510_v54, %v481_v59  ;;  %v492_v61 = vadd.f32 %v510_v54, %v491_v60 }
 0x341   :  { %501 = vst [vmem:[%s1073_s9 + $0x8] sm:$0xff] %v487_v57  ;;  %503 = vst [vmem:[%s1073_s9 + $0x18] sm:$0xff] %v497_v58 }
 0x342   :  { %500 = vst [vmem:[%s1073_s9] sm:$0xff] %v482_v22  ;;  %502 = vst [vmem:[%s1073_s9 + $0x10] sm:$0xff] %v492_v61 }
 0x343   :  { %508 = vsyncpa [#allocation3], 1 }
 0x344   :  { %509 = vsyncpa [#allocation5], 1 }

</bundles_post_ra>
